<compile_context>
chip_gen: v7x
topology: tpu7x:2x2x1
jax: 0.10.0
libtpu: 0.0.40
codegen_flags: <defaults>
</compile_context>

<pallas_src>
import functools

import jax
import jax.numpy as jnp
from jax.experimental import pallas as pl
from jax.experimental.pallas import tpu as pltpu


def _round_up(n: int, m: int) -> int:
    return ((n + m - 1) // m) * m


def _pick_defaults():
    """Generation-aware default tiles + VMEM limit (safe fallback on error)."""
    try:
        vmem = pltpu.get_tpu_info().vmem_capacity_bytes
    except Exception:
        vmem = 64 * 1024 * 1024
    if vmem >= 100 * 1024 * 1024:
        # v5e / v6e: 128 MiB VMEM -> 32 MiB tile (64 MiB double-buffered).
        return 2048, 4096, 96 * 1024 * 1024
    # v7x (64 MiB VMEM) or unknown: 8 MiB tile (16 MiB double-buffered).
    return 1024, 2048, 40 * 1024 * 1024


_DEF_BB, _DEF_BD, _VMEM_LIMIT = _pick_defaults()


def _gemv_kernel(*refs, d_total: int, td: int, single_k: bool,
                 mask_d: bool, has_bias: bool):
    if has_bias:
        x_ref, w_ref, b_ref, o_ref = refs
    else:
        x_ref, w_ref, o_ref = refs
        b_ref = None

    k = pl.program_id(1)  # reduction (feature) axis, iterated last

    x = x_ref[...]
    if mask_d:
        # Last k-tile extends past input_dim: zero the garbage tail columns.
        # (Weight tail rows are zero-padded in the wrapper, so 0*0 == 0.)
        valid = d_total - k * td
        col = jax.lax.broadcasted_iota(jnp.int32, x.shape, 1)
        x = jnp.where(col < valid, x, jnp.zeros_like(x))

    # (tb, td) @ (td, 1) -> (tb, 1): x's contraction dim stays on lanes,
    # the weight column's contraction dim is on sublanes -> no big-tile
    # transpose is needed to feed the MXU.
    part = jnp.dot(x, w_ref[...], preferred_element_type=jnp.float32)

    if single_k:
        # Typical tabular case: whole D in one tile -> write result directly.
        if b_ref is not None:
            part = part + b_ref[0, 0]  # scalar bias from SMEM
        o_ref[...] = part
    else:
        # Accumulate in f32 directly into the k-invariant output block.
        @pl.when(k == 0)
        def _init():
            o_ref[...] = jnp.zeros_like(o_ref)

        o_ref[...] += part

        if b_ref is not None:
            @pl.when(k == pl.num_programs(1) - 1)
            def _finalize():
                o_ref[...] += b_ref[0, 0]


@functools.partial(
    jax.jit, static_argnames=("block_batch", "block_d", "min_pallas_bytes")
)
def vertical_poisson_regression_forward(
    x, weight, bias=None, *, block_batch=None, block_d=None,
    min_pallas_bytes: int = 1 << 20,
):
    """Forward pass of VerticalPoissonRegression.

    x:      (batch, input_dim) float32
    weight: (1, input_dim) float32  (PyTorch nn.Linear weight layout)
    bias:   (1,) float32 or None
    returns (batch, 1) float32
    """
    batch, input_dim = x.shape
    out_dtype = x.dtype
    has_bias = bias is not None

    # Tiny inputs (the module's usual tabular batches): XLA beats the
    # pallas_call dispatch + pipeline ramp by >10x.
    if batch * input_dim * x.dtype.itemsize < min_pallas_bytes:
        y = x @ weight.T
        if has_bias:
            y = y + bias
        return y.astype(out_dtype)

    bb = block_batch if block_batch is not None else _DEF_BB
    bd = block_d if block_d is not None else _DEF_BD

    # ---- batch tile: NO padding of x. Partial edge block's garbage rows only
    # produce output rows >= batch, which Pallas masks on store. Cap the tile
    # at ~batch/2 so nb >= 2 and both v7x TensorCores get work.
    if batch <= 8:
        tb = batch  # block dim == full dim -> always legal
    else:
        tb = min(_round_up(bb, 8), _round_up(pl.cdiv(batch, 2), 8))
    nb = pl.cdiv(batch, tb)

    # ---- feature (reduction) tile: NO padding of x. Tail of the last k-tile
    # is masked to zero in-kernel when td does not divide input_dim.
    if input_dim <= bd:
        td, kd = input_dim, 1
    else:
        td = _round_up(bd, 128)
        kd = pl.cdiv(input_dim, td)
    single_k = kd == 1
    mask_d = (not single_k) and (input_dim % td != 0)

    # Weight as a lane->sublane column (td on sublanes) so the MXU contraction
    # needs no transpose of the streamed x tile. Only this tiny array is
    # zero-padded so the K tail multiplies against zeros.
    w_col = weight.reshape(input_dim, 1).astype(x.dtype)
    padded_d = kd * td
    if padded_d != input_dim:
        w_col = jnp.pad(w_col, ((0, padded_d - input_dim), (0, 0)))

    in_specs = [
        pl.BlockSpec((tb, td), lambda i, k: (i, k)),  # x: streamed, dbl-buffered
        pl.BlockSpec((td, 1), lambda i, k: (k, 0)),   # weight column (tiny)
    ]
    args = [x, w_col]
    if has_bias:
        in_specs.append(pl.BlockSpec(memory_space=pltpu.MemorySpace.SMEM))
        args.append(jnp.asarray(bias, jnp.float32).reshape(1, 1))

    out = pl.pallas_call(
        functools.partial(
            _gemv_kernel, d_total=input_dim, td=td, single_k=single_k,
            mask_d=mask_d, has_bias=has_bias,
        ),
        out_shape=jax.ShapeDtypeStruct((batch, 1), jnp.float32),
        grid_spec=pltpu.PrefetchScalarGridSpec(
            num_scalar_prefetch=0,
            grid=(nb, kd),  # reduction axis last
            in_specs=in_specs,
            out_specs=pl.BlockSpec((tb, 1), lambda i, k: (i, 0)),
        ),
        compiler_params=pltpu.CompilerParams(
            dimension_semantics=("parallel", "arbitrary"),
            vmem_limit_bytes=_VMEM_LIMIT,
        ),
    )(*args)

    return out.astype(out_dtype)


if __name__ == "__main__":
    key = jax.random.PRNGKey(0)
    k_x, k_w, k_b, k_x2, k_w2 = jax.random.split(key, 5)

    # Small shapes consistent with the module (tabular features).
    batch, input_dim = 8, 32
    x = jax.random.normal(k_x, (batch, input_dim), dtype=jnp.float32)
    bound = 1.0 / jnp.sqrt(jnp.float32(input_dim))
    weight = jax.random.uniform(
        k_w, (1, input_dim), jnp.float32, minval=-bound, maxval=bound
    )

    # bias=False (module default) -- force the Pallas path.
    y = vertical_poisson_regression_forward(x, weight, min_pallas_bytes=0)
    y = jax.block_until_ready(y)
    y_ref = x @ weight.T
    assert y.shape == (batch, 1)
    assert jnp.allclose(y, y_ref, atol=1e-5, rtol=1e-5)

    # bias=True path (scalar bias in SMEM).
    bias = jax.random.uniform(k_b, (1,), jnp.float32, minval=-bound, maxval=bound)
    yb = vertical_poisson_regression_forward(x, weight, bias, min_pallas_bytes=0)
    yb = jax.block_until_ready(yb)
    assert jnp.allclose(yb, x @ weight.T + bias, atol=1e-5, rtol=1e-5)

    # Ragged batch + multi-tile reduction: exercises partial batch edge block,
    # in-kernel K-tail masking, and direct f32 accumulation into o_ref.
    b2, d2 = 300, 200
    x2 = jax.random.normal(k_x2, (b2, d2), dtype=jnp.float32)
    w2 = jax.random.uniform(k_w2, (1, d2), jnp.float32, minval=-bound, maxval=bound)
    y2 = vertical_poisson_regression_forward(
        x2, w2, block_batch=128, block_d=128, min_pallas_bytes=0
    )
    y2 = jax.block_until_ready(y2)
    assert y2.shape == (b2, 1)
    assert jnp.allclose(y2, x2 @ w2.T, atol=1e-4, rtol=1e-4)

    # Default-size call exercises the XLA fallback for tiny tabular batches.
    y3 = vertical_poisson_regression_forward(x, weight, bias)
    y3 = jax.block_until_ready(y3)
    assert jnp.allclose(y3, x @ weight.T + bias, atol=1e-5, rtol=1e-5)

    print("KERNEL_OK")
</pallas_src>

<mosaic_0001>
module attributes {stable_mosaic.version = 11 : i64} {
  func.func @_gemv_kernel(%arg0: i32, %arg1: i32, %arg2: memref<8x32xf32, #tpu.memory_space<vmem>>, %arg3: memref<32x1xf32, #tpu.memory_space<vmem>>, %arg4: memref<8x1xf32, #tpu.memory_space<vmem>>) attributes {dimension_semantics = [#tpu.dimension_semantics<parallel>, #tpu.dimension_semantics<arbitrary>], iteration_bounds = array<i64: 1, 1>, scalar_prefetch = 0 : i64, scratch_operands = 0 : i64, tpu.core_type = #tpu.core_type<tc>, window_params = [{transform_indices = @transform_0, window_bounds = array<i64: 8, 32>}, {transform_indices = @transform_1, window_bounds = array<i64: 32, 1>}, {transform_indices = @transform_2, window_bounds = array<i64: 8, 1>}]} {
    %c0 = arith.constant 0 : index
    %c0_0 = arith.constant 0 : index
    %0 = vector.load %arg2[%c0, %c0_0] : memref<8x32xf32, #tpu.memory_space<vmem>>, vector<8x32xf32>
    %c0_1 = arith.constant 0 : index
    %c0_2 = arith.constant 0 : index
    %1 = vector.load %arg3[%c0_1, %c0_2] : memref<32x1xf32, #tpu.memory_space<vmem>>, vector<32x1xf32>
    %cst = arith.constant dense<0.000000e+00> : vector<8x1xf32>
    %2 = tpu.matmul %0, %1, %cst {dimension_numbers = #tpu.dot_dimension_numbers<[1], [0], [0], [1], [0, 0, 1, 1], [], []>} : vector<8x32xf32>, vector<32x1xf32>, vector<8x1xf32> -> vector<8x1xf32>
    %c0_3 = arith.constant 0 : index
    %c0_4 = arith.constant 0 : index
    %3 = vector.load %arg4[%c0_3, %c0_4] : memref<8x1xf32, #tpu.memory_space<vmem>>, vector<8x1xf32>
    tpu.vector_store %arg4[%c0_3, %c0_4], %2 {strides = array<i32>} : memref<8x1xf32, #tpu.memory_space<vmem>>, vector<8x1xf32>,
    return
  }
  func.func @transform_0(%arg0: i32, %arg1: i32) -> (i32, i32) {
    %c0_i32 = arith.constant 0 : i32
    return %arg0, %arg1 : i32, i32
  }
  func.func @transform_1(%arg0: i32, %arg1: i32) -> (i32, i32) {
    %c0_i32 = arith.constant 0 : i32
    %c0_i32_0 = arith.constant 0 : i32
    return %arg1, %c0_i32 : i32, i32
  }
  func.func @transform_2(%arg0: i32, %arg1: i32) -> (i32, i32) {
    %c0_i32 = arith.constant 0 : i32
    %c0_i32_0 = arith.constant 0 : i32
    return %arg0, %c0_i32 : i32, i32
  }
}

</mosaic_0001>

<bundles_post_ra>
// kernel: vertical_poisson_regression_forward.1
= control target key start
LH: loop header
LB: loop body
LE: loop exit
PB: predicated region body
PF: predicated region fallthrough
CT: control target
= control target key end

     0   :  { %v122_v0 = vmov 0.0|0.0   ;;  %vm123_vm0 = vmmov 0   ;;  %v124_v4 = vmov 0.0   ;;  %vm16_vm1 = vcmask 261120   ;;  %s158_s1 = inlined_call_operand.vmem [shape: f32[32,1], index: 1, kind: input, shape index: {}]   ;;  %s159_s0 = inlined_call_operand.vmem [shape: f32[8,32], index: 0, kind: input, shape index: {}]   ;;  %s160_s2 = inlined_call_operand.vmem [shape: f32[8,1], index: 2, kind: output, shape index: {}]  }
   0x1   :  { %113 = vmatprep.subr.bf16.mxu0 %v122_v0  ;;  %v12_v1 = vld [vmem:[%s158_s1] sm:$0xff]  ;;  %v13_v2 = vld [vmem:[%s158_s1 + $0x8] sm:$0xff]  ;;  %v14_v3 = vld [vmem:[%s158_s1 + $0x10] sm:$0xff]  ;;  %110 = vmatprep.mubr.msk.f32.mxu0 %vm123_vm0, %v124_v4  ;;  %vm90_vm2 = vcmask 7168  }
   0x2   :  { %v114_v5 = vpack.c.bf16 %v13_v2, %v12_v1  ;;  %v15_v6 = vld [vmem:[%s158_s1 + $0x18] sm:$0xff]  ;;  %v11_v8 = vld [vmem:[%s159_s0] sm:$0xff] }
   0x3   :  { %v117_v7 = vpack.c.bf16 %v15_v6, %v14_v3 }
   0x4   :  { %115 = vmatpush3.bf16.msra.mxu0 %v114_v5 }
   0x5   :  { %116 = vmatprep.subr.bf16.mxu0 %v122_v0 }
   0x8   :  { %118 = vmatpush3.bf16.msra.mxu0 %v117_v7 }
   0xb   :  { %111 = vmatmul.mubr.msk.f32.vlgmr.msra.gmra.mrb[0].mxu0 %vm16_vm1, %v11_v8 }
  0xde   :  { %v86_v9 = vpop.f32.mrb[0].mxu0 }
  0xdf   :  { %91 = vst.msk [vmem:[%s160_s2] sm:$0xff] %vm90_vm2, %v86_v9  ;;  %v112_v10 = vpop.f32.mrb[1].mxu0 }

</bundles_post_ra>
